<compile_context>
chip_gen: v7x
topology: tpu7x:2x2x1
jax: 0.10.0
libtpu: 0.0.40
codegen_flags: <defaults>
</compile_context>

<pallas_src>
import math

import jax
import jax.numpy as jnp
from jax.experimental import pallas as pl
from jax.experimental.pallas import tpu as pltpu


# --------------------------------------------------------------------------
# Kernel
# --------------------------------------------------------------------------
def _parm_v2_kernel(x_ref, w_ref, b_ref, out_ref):
    f32 = jnp.float32
    wdt = w_ref.dtype
    x = x_ref[...]                                  # [8, TB] f32
    xc = x.astype(wdt)                              # hoisted: cast input once

    def mm(i, m, k, act):
        # Only the live [m, k] window of weight block i; f32 accumulation.
        return jnp.dot(w_ref[i, :m, :k], act, preferred_element_type=f32)

    def bias(j, m):
        return b_ref[:m, j:j + 1]                   # [m, 1] f32, lane-broadcast

    # Fused layer-1: performance Linear(3,64) -> rows 0:64,
    #                sv_ratio   Linear(1,16)  -> rows 64:80   (shared input x)
    h01 = jnp.maximum(mm(0, 80, 8, xc) + bias(0, 80), 0.0)            # [80, TB]
    h_perf = h01[:64]                                                  # [64, TB]
    h_sv = h01[64:80]                                                  # [16, TB]

    # performance_processor layer-2: Linear(64, 32)
    perf_feat = mm(1, 32, 64, h_perf.astype(wdt)) + bias(1, 32)        # [32, TB]

    # sv_ratio_transformer layer-2: Linear(16, 8)
    sv_val = mm(2, 8, 16, h_sv.astype(wdt)) + bias(2, 8)               # [8, TB]

    # conditional_gate: Linear(8,16) -> ReLU -> Linear(16,32) -> Sigmoid
    g = jnp.maximum(mm(3, 16, 8, sv_val.astype(wdt)) + bias(3, 16), 0.0)
    gate = jax.nn.sigmoid(mm(4, 32, 16, g.astype(wdt)) + bias(4, 32))  # [32, TB]

    gated = perf_feat * gate                                           # [32, TB] f32

    # reward_head: Linear(40,64) on the re-fused [40, TB] operand (concat at an
    # f32 vreg boundary -> layout only) -> ReLU -> [Dropout=id]
    # -> Linear(64,32) -> ReLU -> [Dropout=id] -> Linear(32,1)
    comb = jnp.concatenate([gated, sv_val], axis=0).astype(wdt)        # [40, TB]
    h = jnp.maximum(mm(5, 64, 40, comb) + bias(5, 64), 0.0)            # [64, TB]
    h = jnp.maximum(mm(6, 32, 64, h.astype(wdt)) + bias(6, 32), 0.0)   # [32, TB]
    out = mm(7, 8, 32, h.astype(wdt)) + bias(7, 8)                     # [8, TB]; rows 1:8 == 0
    out_ref[...] = out[:1].astype(out_ref.dtype)                       # lane-dense [1, TB] store


# --------------------------------------------------------------------------
# Wrapper
# --------------------------------------------------------------------------
def _round_up(x, m):
    return ((x + m - 1) // m) * m


def _choose_tb(B, tb_max):
    """Tile size: multiple of 128, >= 2 grid steps whenever B allows it (both
    v7x TensorCores get work), capped at tb_max to bound per-step working set."""
    n128 = _round_up(B, 128) // 128
    chunks = max(1, min(max(tb_max // 128, 1), (n128 + 1) // 2))
    return 128 * chunks


def parm_v2_forward(state, w_packed, b_packed, *, tb=512):
    """state: [B, 4] float32 -> reward: [B] float32 (== reward_head(...).squeeze(-1))."""
    B = state.shape[0]
    tb = _choose_tb(B, tb)
    b_pad = _round_up(B, tb)

    # Batch on lanes: [B, 4] -> [4, B] -> zero-pad to [8, b_pad].
    xt = jnp.transpose(state.astype(jnp.float32))
    xt = jnp.pad(xt, ((0, 8 - xt.shape[0]), (0, b_pad - B)))

    out = pl.pallas_call(
        _parm_v2_kernel,
        out_shape=jax.ShapeDtypeStruct((1, b_pad), jnp.float32),
        grid=(b_pad // tb,),
        in_specs=[
            pl.BlockSpec((8, tb), lambda i: (0, i)),             # state tile (auto-pipelined)
            pl.BlockSpec(w_packed.shape, lambda i: (0, 0, 0)),   # packed weights: VMEM-resident
            pl.BlockSpec(b_packed.shape, lambda i: (0, 0)),      # packed biases:  VMEM-resident
        ],
        out_specs=pl.BlockSpec((1, tb), lambda i: (0, i)),
        compiler_params=pltpu.CompilerParams(
            dimension_semantics=("parallel",),                   # batch grid split across v7x's 2 TCs
        ),
    )(xt, w_packed, b_packed)
    return out[0, :B]


# --------------------------------------------------------------------------
# Parameters: Xavier-uniform weights / zero biases (PyTorch [out, in] layout).
# --------------------------------------------------------------------------
def init_params(key):
    shapes = [
        (64, 3), (32, 64),            # performance_processor
        (16, 1), (8, 16),             # sv_ratio_transformer
        (16, 8), (32, 16),            # conditional_gate
        (64, 40), (32, 64), (1, 32),  # reward_head
    ]
    keys = jax.random.split(key, len(shapes))
    raw = []
    for k, (fo, fi) in zip(keys, shapes):
        bound = math.sqrt(6.0 / (fi + fo))
        w = jax.random.uniform(k, (fo, fi), jnp.float32, -bound, bound)
        raw.append((w, jnp.zeros((fo,), jnp.float32)))
    return raw


def pack_params(raw, matmul_dtype=jnp.bfloat16):
    """Pack 9 (W, b) pairs into one [8, 80, 64] weight buffer (matmul_dtype,
    bf16 by default) + one [80, 16] f32 bias buffer, zero padded.

    Block 0 fuses performance L1 (rows 0:64, cols 0:3) with sv L1 (rows 64:80,
    col 3); block 5 is the full reward_head Linear(40,64); block 7 holds the
    final Linear(32,1) in row 0 of an 8-row slab.  Exact zero padding keeps the
    sliced compute in the kernel bit-identical to the unpadded math."""
    (wp1, bp1), (wp2, bp2), (ws1, bs1), (ws2, bs2), (wg1, bg1), (wg2, bg2), \
        (wr1, br1), (wr2, br2), (wr3, br3) = raw

    W = jnp.zeros((8, 80, 64), jnp.float32)
    W = W.at[0, 0:64, 0:3].set(wp1)       # acts on state rows 0:3 (perf metrics)
    W = W.at[0, 64:80, 3:4].set(ws1)      # acts on state row 3 (sv ratio)
    W = W.at[1, 0:32, 0:64].set(wp2)
    W = W.at[2, 0:8, 0:16].set(ws2)
    W = W.at[3, 0:16, 0:8].set(wg1)
    W = W.at[4, 0:32, 0:16].set(wg2)
    W = W.at[5, 0:64, 0:40].set(wr1)      # full reward_head L1 (no split / no concat of weights)
    W = W.at[6, 0:32, 0:64].set(wr2)
    W = W.at[7, 0:1, 0:32].set(wr3)

    Bp = jnp.zeros((80, 16), jnp.float32)   # biases stay f32 (elementwise stays f32 on v5e)
    Bp = Bp.at[0:64, 0].set(bp1)
    Bp = Bp.at[64:80, 0].set(bs1)
    Bp = Bp.at[0:32, 1].set(bp2)
    Bp = Bp.at[0:8, 2].set(bs2)
    Bp = Bp.at[0:16, 3].set(bg1)
    Bp = Bp.at[0:32, 4].set(bg2)
    Bp = Bp.at[0:64, 5].set(br1)
    Bp = Bp.at[0:32, 6].set(br2)
    Bp = Bp.at[0:1, 7].set(br3)

    return W.astype(matmul_dtype), Bp


# --------------------------------------------------------------------------
# Pure-JAX reference (mirrors the PyTorch forward) for correctness checks.
# --------------------------------------------------------------------------
def _reference_forward(state, raw):
    hi = jax.lax.Precision.HIGHEST

    def lin(x, wb):
        w, b = wb
        return jnp.dot(x, w.T, precision=hi) + b

    p1, p2, s1, s2, g1, g2, r1, r2, r3 = raw
    perf, sv = state[:, :3], state[:, 3:4]
    perf_feat = lin(jnp.maximum(lin(perf, p1), 0.0), p2)
    sv_val = lin(jnp.maximum(lin(sv, s1), 0.0), s2)
    gate = jax.nn.sigmoid(lin(jnp.maximum(lin(sv_val, g1), 0.0), g2))
    comb = jnp.concatenate([perf_feat * gate, sv_val], axis=-1)
    h = jnp.maximum(lin(comb, r1), 0.0)
    h = jnp.maximum(lin(h, r2), 0.0)
    return lin(h, r3)[:, 0]


# --------------------------------------------------------------------------
# Main
# --------------------------------------------------------------------------
if __name__ == "__main__":
    key = jax.random.PRNGKey(0)
    k_param, k_state = jax.random.split(key)

    raw_params = init_params(k_param)

    B = 256
    state = jax.random.normal(k_state, (B, 4), dtype=jnp.float32)
    ref = _reference_forward(state, raw_params)

    # Default (fast) path: bf16 weight packing, f32 accumulation/elementwise.
    w_bf16, b_f32 = pack_params(raw_params)                     # bf16 weights
    reward = parm_v2_forward(state, w_bf16, b_f32, tb=512)      # -> tb=128, 2 grid steps
    jax.block_until_ready(reward)
    assert reward.shape == (B,), reward.shape
    err_bf16 = float(jnp.max(jnp.abs(reward - ref)))
    assert err_bf16 < 5e-2, f"bf16 path error too large: {err_bf16}"

    # Exactness check: f32 weight packing against the HIGHEST-precision reference.
    w_f32, _ = pack_params(raw_params, matmul_dtype=jnp.float32)
    reward_f32 = parm_v2_forward(state, w_f32, b_f32, tb=512)
    jax.block_until_ready(reward_f32)
    err_f32 = float(jnp.max(jnp.abs(reward_f32 - ref)))
    assert err_f32 < 1e-3, f"f32 path error too large: {err_f32}"

    print("KERNEL_OK")
</pallas_src>

<mosaic_0001>
module attributes {stable_mosaic.version = 11 : i64} {
  func.func @_parm_v2_kernel(%arg0: i32, %arg1: memref<8x128xf32, #tpu.memory_space<vmem>>, %arg2: memref<8x80x64xbf16, #tpu.memory_space<vmem>>, %arg3: memref<80x16xf32, #tpu.memory_space<vmem>>, %arg4: memref<1x128xf32, #tpu.memory_space<vmem>>) attributes {dimension_semantics = [#tpu.dimension_semantics<parallel>], iteration_bounds = array<i64: 2>, scalar_prefetch = 0 : i64, scratch_operands = 0 : i64, tpu.core_type = #tpu.core_type<tc>, window_params = [{transform_indices = @transform_0, window_bounds = array<i64: 8, 128>}, {pipeline_mode = #tpu.pipeline_mode<synchronous>, transform_indices = @transform_1, window_bounds = array<i64: 8, 80, 64>}, {pipeline_mode = #tpu.pipeline_mode<synchronous>, transform_indices = @transform_2, window_bounds = array<i64: 80, 16>}, {transform_indices = @transform_3, window_bounds = array<i64: 1, 128>}]} {
    %c0 = arith.constant 0 : index
    %c0_0 = arith.constant 0 : index
    %0 = vector.load %arg1[%c0, %c0_0] : memref<8x128xf32, #tpu.memory_space<vmem>>, vector<8x128xf32>
    %1 = arith.truncf %0 : vector<8x128xf32> to vector<8x128xbf16>
    %c0_1 = arith.constant 0 : index
    %c0_2 = arith.constant 0 : index
    %c0_3 = arith.constant 0 : index
    %2 = vector.load %arg2[%c0_1, %c0_2, %c0_3] : memref<8x80x64xbf16, #tpu.memory_space<vmem>>, vector<1x80x8xbf16>
    %3 = vector.shape_cast %2 : vector<1x80x8xbf16> to vector<80x8xbf16>
    %cst = arith.constant dense<0.000000e+00> : vector<80x128xf32>
    %4 = tpu.matmul %3, %1, %cst {dimension_numbers = #tpu.dot_dimension_numbers<[1], [0], [0], [1], [0, 0, 1, 1], [], []>} : vector<80x8xbf16>, vector<8x128xbf16>, vector<80x128xf32> -> vector<80x128xf32>
    %c0_4 = arith.constant 0 : index
    %c0_5 = arith.constant 0 : index
    %5 = vector.load %arg3[%c0_4, %c0_5] : memref<80x16xf32, #tpu.memory_space<vmem>>, vector<80x1xf32>
    %6 = vector.broadcast %5 : vector<80x1xf32> to vector<80x128xf32>
    %7 = arith.addf %4, %6 : vector<80x128xf32>
    %cst_6 = arith.constant 0.000000e+00 : f32
    %8 = vector.broadcast %cst_6 : f32 to vector<80x128xf32>
    %9 = arith.maximumf %7, %8 : vector<80x128xf32>
    %10 = vector.extract_strided_slice %9 {offsets = [0, 0], sizes = [64, 128], strides = [1, 1]} : vector<80x128xf32> to vector<64x128xf32>
    %11 = vector.extract_strided_slice %9 {offsets = [64, 0], sizes = [16, 128], strides = [1, 1]} : vector<80x128xf32> to vector<16x128xf32>
    %12 = arith.truncf %10 : vector<64x128xf32> to vector<64x128xbf16>
    %c1 = arith.constant 1 : index
    %c0_7 = arith.constant 0 : index
    %c0_8 = arith.constant 0 : index
    %13 = vector.load %arg2[%c1, %c0_7, %c0_8] : memref<8x80x64xbf16, #tpu.memory_space<vmem>>, vector<1x32x64xbf16>
    %14 = vector.shape_cast %13 : vector<1x32x64xbf16> to vector<32x64xbf16>
    %cst_9 = arith.constant dense<0.000000e+00> : vector<32x128xf32>
    %15 = tpu.matmul %14, %12, %cst_9 {dimension_numbers = #tpu.dot_dimension_numbers<[1], [0], [0], [1], [0, 0, 1, 1], [], []>} : vector<32x64xbf16>, vector<64x128xbf16>, vector<32x128xf32> -> vector<32x128xf32>
    %c0_10 = arith.constant 0 : index
    %c1_11 = arith.constant 1 : index
    %16 = vector.load %arg3[%c0_10, %c1_11] : memref<80x16xf32, #tpu.memory_space<vmem>>, vector<32x1xf32>
    %17 = vector.broadcast %16 : vector<32x1xf32> to vector<32x128xf32>
    %18 = arith.addf %15, %17 : vector<32x128xf32>
    %19 = arith.truncf %11 : vector<16x128xf32> to vector<16x128xbf16>
    %c2 = arith.constant 2 : index
    %c0_12 = arith.constant 0 : index
    %c0_13 = arith.constant 0 : index
    %20 = vector.load %arg2[%c2, %c0_12, %c0_13] : memref<8x80x64xbf16, #tpu.memory_space<vmem>>, vector<1x8x16xbf16>
    %21 = vector.shape_cast %20 : vector<1x8x16xbf16> to vector<8x16xbf16>
    %cst_14 = arith.constant dense<0.000000e+00> : vector<8x128xf32>
    %22 = tpu.matmul %21, %19, %cst_14 {dimension_numbers = #tpu.dot_dimension_numbers<[1], [0], [0], [1], [0, 0, 1, 1], [], []>} : vector<8x16xbf16>, vector<16x128xbf16>, vector<8x128xf32> -> vector<8x128xf32>
    %c0_15 = arith.constant 0 : index
    %c2_16 = arith.constant 2 : index
    %23 = vector.load %arg3[%c0_15, %c2_16] : memref<80x16xf32, #tpu.memory_space<vmem>>, vector<8x1xf32>
    %24 = vector.broadcast %23 : vector<8x1xf32> to vector<8x128xf32>
    %25 = arith.addf %22, %24 : vector<8x128xf32>
    %26 = arith.truncf %25 : vector<8x128xf32> to vector<8x128xbf16>
    %c3 = arith.constant 3 : index
    %c0_17 = arith.constant 0 : index
    %c0_18 = arith.constant 0 : index
    %27 = vector.load %arg2[%c3, %c0_17, %c0_18] : memref<8x80x64xbf16, #tpu.memory_space<vmem>>, vector<1x16x8xbf16>
    %28 = vector.shape_cast %27 : vector<1x16x8xbf16> to vector<16x8xbf16>
    %cst_19 = arith.constant dense<0.000000e+00> : vector<16x128xf32>
    %29 = tpu.matmul %28, %26, %cst_19 {dimension_numbers = #tpu.dot_dimension_numbers<[1], [0], [0], [1], [0, 0, 1, 1], [], []>} : vector<16x8xbf16>, vector<8x128xbf16>, vector<16x128xf32> -> vector<16x128xf32>
    %c0_20 = arith.constant 0 : index
    %c3_21 = arith.constant 3 : index
    %30 = vector.load %arg3[%c0_20, %c3_21] : memref<80x16xf32, #tpu.memory_space<vmem>>, vector<16x1xf32>
    %31 = vector.broadcast %30 : vector<16x1xf32> to vector<16x128xf32>
    %32 = arith.addf %29, %31 : vector<16x128xf32>
    %cst_22 = arith.constant 0.000000e+00 : f32
    %33 = vector.broadcast %cst_22 : f32 to vector<16x128xf32>
    %34 = arith.maximumf %32, %33 : vector<16x128xf32>
    %35 = arith.truncf %34 : vector<16x128xf32> to vector<16x128xbf16>
    %c4 = arith.constant 4 : index
    %c0_23 = arith.constant 0 : index
    %c0_24 = arith.constant 0 : index
    %36 = vector.load %arg2[%c4, %c0_23, %c0_24] : memref<8x80x64xbf16, #tpu.memory_space<vmem>>, vector<1x32x16xbf16>
    %37 = vector.shape_cast %36 : vector<1x32x16xbf16> to vector<32x16xbf16>
    %cst_25 = arith.constant dense<0.000000e+00> : vector<32x128xf32>
    %38 = tpu.matmul %37, %35, %cst_25 {dimension_numbers = #tpu.dot_dimension_numbers<[1], [0], [0], [1], [0, 0, 1, 1], [], []>} : vector<32x16xbf16>, vector<16x128xbf16>, vector<32x128xf32> -> vector<32x128xf32>
    %c0_26 = arith.constant 0 : index
    %c4_27 = arith.constant 4 : index
    %39 = vector.load %arg3[%c0_26, %c4_27] : memref<80x16xf32, #tpu.memory_space<vmem>>, vector<32x1xf32>
    %40 = vector.broadcast %39 : vector<32x1xf32> to vector<32x128xf32>
    %41 = arith.addf %38, %40 : vector<32x128xf32>
    %42 = arith.negf %41 : vector<32x128xf32>
    %43 = math.exp %42 : vector<32x128xf32>
    %cst_28 = arith.constant 1.000000e+00 : f32
    %44 = vector.broadcast %cst_28 : f32 to vector<32x128xf32>
    %45 = arith.addf %44, %43 : vector<32x128xf32>
    %46 = arith.divf %44, %45 : vector<32x128xf32>
    %47 = arith.mulf %18, %46 : vector<32x128xf32>
    %48 = tpu.concatenate %47, %25 in 0 : vector<32x128xf32>, vector<8x128xf32> -> vector<40x128xf32>
    %49 = arith.truncf %48 : vector<40x128xf32> to vector<40x128xbf16>
    %c5 = arith.constant 5 : index
    %c0_29 = arith.constant 0 : index
    %c0_30 = arith.constant 0 : index
    %50 = vector.load %arg2[%c5, %c0_29, %c0_30] : memref<8x80x64xbf16, #tpu.memory_space<vmem>>, vector<1x64x40xbf16>
    %51 = vector.shape_cast %50 : vector<1x64x40xbf16> to vector<64x40xbf16>
    %cst_31 = arith.constant dense<0.000000e+00> : vector<64x128xf32>
    %52 = tpu.matmul %51, %49, %cst_31 {dimension_numbers = #tpu.dot_dimension_numbers<[1], [0], [0], [1], [0, 0, 1, 1], [], []>} : vector<64x40xbf16>, vector<40x128xbf16>, vector<64x128xf32> -> vector<64x128xf32>
    %c0_32 = arith.constant 0 : index
    %c5_33 = arith.constant 5 : index
    %53 = vector.load %arg3[%c0_32, %c5_33] : memref<80x16xf32, #tpu.memory_space<vmem>>, vector<64x1xf32>
    %54 = vector.broadcast %53 : vector<64x1xf32> to vector<64x128xf32>
    %55 = arith.addf %52, %54 : vector<64x128xf32>
    %cst_34 = arith.constant 0.000000e+00 : f32
    %56 = vector.broadcast %cst_34 : f32 to vector<64x128xf32>
    %57 = arith.maximumf %55, %56 : vector<64x128xf32>
    %58 = arith.truncf %57 : vector<64x128xf32> to vector<64x128xbf16>
    %c6 = arith.constant 6 : index
    %c0_35 = arith.constant 0 : index
    %c0_36 = arith.constant 0 : index
    %59 = vector.load %arg2[%c6, %c0_35, %c0_36] : memref<8x80x64xbf16, #tpu.memory_space<vmem>>, vector<1x32x64xbf16>
    %60 = vector.shape_cast %59 : vector<1x32x64xbf16> to vector<32x64xbf16>
    %cst_37 = arith.constant dense<0.000000e+00> : vector<32x128xf32>
    %61 = tpu.matmul %60, %58, %cst_37 {dimension_numbers = #tpu.dot_dimension_numbers<[1], [0], [0], [1], [0, 0, 1, 1], [], []>} : vector<32x64xbf16>, vector<64x128xbf16>, vector<32x128xf32> -> vector<32x128xf32>
    %c0_38 = arith.constant 0 : index
    %c6_39 = arith.constant 6 : index
    %62 = vector.load %arg3[%c0_38, %c6_39] : memref<80x16xf32, #tpu.memory_space<vmem>>, vector<32x1xf32>
    %63 = vector.broadcast %62 : vector<32x1xf32> to vector<32x128xf32>
    %64 = arith.addf %61, %63 : vector<32x128xf32>
    %cst_40 = arith.constant 0.000000e+00 : f32
    %65 = vector.broadcast %cst_40 : f32 to vector<32x128xf32>
    %66 = arith.maximumf %64, %65 : vector<32x128xf32>
    %67 = arith.truncf %66 : vector<32x128xf32> to vector<32x128xbf16>
    %c7 = arith.constant 7 : index
    %c0_41 = arith.constant 0 : index
    %c0_42 = arith.constant 0 : index
    %68 = vector.load %arg2[%c7, %c0_41, %c0_42] : memref<8x80x64xbf16, #tpu.memory_space<vmem>>, vector<1x8x32xbf16>
    %69 = vector.shape_cast %68 : vector<1x8x32xbf16> to vector<8x32xbf16>
    %cst_43 = arith.constant dense<0.000000e+00> : vector<8x128xf32>
    %70 = tpu.matmul %69, %67, %cst_43 {dimension_numbers = #tpu.dot_dimension_numbers<[1], [0], [0], [1], [0, 0, 1, 1], [], []>} : vector<8x32xbf16>, vector<32x128xbf16>, vector<8x128xf32> -> vector<8x128xf32>
    %c0_44 = arith.constant 0 : index
    %c7_45 = arith.constant 7 : index
    %71 = vector.load %arg3[%c0_44, %c7_45] : memref<80x16xf32, #tpu.memory_space<vmem>>, vector<8x1xf32>
    %72 = vector.broadcast %71 : vector<8x1xf32> to vector<8x128xf32>
    %73 = arith.addf %70, %72 : vector<8x128xf32>
    %74 = vector.extract_strided_slice %73 {offsets = [0, 0], sizes = [1, 128], strides = [1, 1]} : vector<8x128xf32> to vector<1x128xf32>
    %c0_46 = arith.constant 0 : index
    %c0_47 = arith.constant 0 : index
    %75 = vector.load %arg4[%c0_46, %c0_47] : memref<1x128xf32, #tpu.memory_space<vmem>>, vector<1x128xf32>
    tpu.vector_store %arg4[%c0_46, %c0_47], %74 {strides = array<i32>} : memref<1x128xf32, #tpu.memory_space<vmem>>, vector<1x128xf32>,
    return
  }
  func.func @transform_0(%arg0: i32) -> (i32, i32) {
    %c0_i32 = arith.constant 0 : i32
    %c0_i32_0 = arith.constant 0 : i32
    return %c0_i32, %arg0 : i32, i32
  }
  func.func @transform_1(%arg0: i32) -> (i32, i32, i32) {
    %c0_i32 = arith.constant 0 : i32
    %c0_i32_0 = arith.constant 0 : i32
    %c0_i32_1 = arith.constant 0 : i32
    %c0_i32_2 = arith.constant 0 : i32
    return %c0_i32, %c0_i32_0, %c0_i32_1 : i32, i32, i32
  }
  func.func @transform_2(%arg0: i32) -> (i32, i32) {
    %c0_i32 = arith.constant 0 : i32
    %c0_i32_0 = arith.constant 0 : i32
    %c0_i32_1 = arith.constant 0 : i32
    return %c0_i32, %c0_i32_0 : i32, i32
  }
  func.func @transform_3(%arg0: i32) -> (i32, i32) {
    %c0_i32 = arith.constant 0 : i32
    %c0_i32_0 = arith.constant 0 : i32
    return %c0_i32, %arg0 : i32, i32
  }
}

</mosaic_0001>

<bundles_post_ra>
// kernel: tpu_custom_call.1
= control target key start
LH: loop header
LB: loop body
LE: loop exit
PB: predicated region body
PF: predicated region fallthrough
CT: control target
= control target key end

     0   :  { %8 = vsyncpa [#allocation3], 0  ;;  %s1757_s0 = inlined_call_operand.vmem [shape: f32[8,256], index: 0, kind: input, shape index: {}]   ;;  %s1758_s1 = inlined_call_operand.vmem [shape: bf16[8,80,64], index: 1, kind: input, shape index: {}]   ;;  %s1759_s2 = inlined_call_operand.vmem [shape: f32[80,16], index: 2, kind: input, shape index: {}]   ;;  %s1760_s3 = inlined_call_operand.hbm [shape: f32[1,256], index: 3, kind: output, shape index: {}]  }
   0x1   :  { %10 = vsyncpa [#allocation3 + $0x1], 0  ;;  %s1464_s12 = smov 0   ;;  %s1466_s13 = smov 0  }
   0x2   :  { %s1468_s14 = smov 0   ;;  %s1470_s15 = smov 0  }
   0x3 LB: > { %s1485_s16 = sadd.s32 4294967295, %s1431_s15   ;;  %s1083_s17 = sadd.s32 4294967294, %s1431_s15   ;;  %s1431_s15 = sphi %s1470_s15, %s1766_s15   ;;  %s1427_s14 = sphi %s1468_s14, %s1765_s14   ;;  %s1423_s13 = sphi %s1466_s13, %s1764_s13   ;;  %s1419_s12 = sphi %s1464_s12, %s1763_s12  }
   0x4   : > { %s1489_s18 = sadd.s32 1, %s1431_s15   ;;  %s91_s19 = sadd.s32 1, %s1427_s14 }
   0x5   : > { %s88_s20 = ssub.s32 %s1431_s15, %s1489_s18  ;;  %p101_p0 = scmp.ne.s32.totalorder %s1427_s14, %s1423_s13 }
   0x6   : > { %p89_p1 = scmp.eq.s32.totalorder %s88_s20, 0  ;;  %p102_p2 = scmp.eq.s32.totalorder %s1485_s16, 1 }
   0x7   : > { %p107_p3 = scmp.ne.s32.totalorder %s1423_s13, %s1419_s12  ;;  %p108_p4 = scmp.eq.s32.totalorder %s1083_s17, 1 }
   0x8   : > { %s1500_s21 = scalar_select %p89_p1, %s1427_s14, %s91_s19  }
   0x9   : > { %p1502_p5 = por %p102_p2, %p101_p0  ;;  %p1506_p6 = por %p108_p4, %p107_p3 }
   0xa   : > { %p1086_p7 = scmp.ge.s32.totalorder %s1431_s15, 1  ;;  %p139_p8 = scmp.lt.s32.totalorder %s1431_s15, 3 }
   0xc   : > { %p140_p9 = pnand %p1086_p7, %p139_p8 }
   0xd   : > { %p161_p10 = scmp.lt.s32.totalorder (!%p140_p9), %s1485_s16, 1  ;;  %v1433_v0 = vmov (!%p140_p9), 0.0   ;;  %vm1434_vm0 = vmmov (!%p140_p9), 0   ;;  %v1435_v1 = vmov (!%p140_p9), 0   ;;  %v1523_v2 = vld [vmem:[%s1759_s2] sm:$0xff] (!%p140_p9)  ;;  %vm279_vm1 = vcmask (!%p140_p9), 1043456  }
   0xe   : > { %143 = sbr.rel (%p140_p9) target bundleno = 1684 (0x694), region = 32  ;;  %1188 = vmatprep.subr.bf16.mxu0 (!%p140_p9), %v1433_v0  ;;  %1190 = vmatprep.mubr.msk.bf16.mxu0 (!%p140_p9), %vm1434_vm0, %v1433_v0  ;;  %v1529_v4 = vld [vmem:[%s1759_s2 + $0x10] sm:$0xff] (!%p140_p9)  ;;  %v1535_v6 = vld [vmem:[%s1759_s2 + $0x8] sm:$0xff] (!%p140_p9)  ;;  %v1337_v7 = vld [vmem:[%s1758_s1] sm:$0xff] (!%p140_p9)   ;;  %vm263_vm2 = vcmask (!%p140_p9), 64512   ;;  %vm409_vm3 = vcmask (!%p140_p9), 523264  }
   0xf   : > { %1324 = vset.pattern.permute.xlu0 (!%p140_p9), %v1435_v1  ;;  %1325 = vset.pattern.permute.xlu1 (!%p140_p9), %v1435_v1  ;;  %v1543_v8 = vld [vmem:[%s1759_s2 + $0x18] sm:$0xff] (!%p140_p9)  ;;  %v1549_v10 = vld [vmem:[%s1759_s2 + $0x20] sm:$0xff] (!%p140_p9)  ;;  %v1555_v11 = vld [vmem:[%s1759_s2 + $0x28] sm:$0xff] (!%p140_p9)  ;;  %v1436_v21 = vmov (!%p140_p9), 3   ;;  %v1437_v22 = vmov (!%p140_p9), 2   ;;  %v1438_v23 = vmov (!%p140_p9), 4  }
  0x10   : > { %190 = vperm.xlu0 (!%p140_p9), %1324, %v1523_v2   ;;  %200 = vperm.xlu1 (!%p140_p9), %1325, %v1529_v4   ;;  %v1562_v12 = vld [vmem:[%s1759_s2 + $0x30] sm:$0xff] (!%p140_p9)  ;;  %v1571_v13 = vld [vmem:[%s1759_s2 + $0x38] sm:$0xff] (!%p140_p9)  ;;  %v1338_v14 = vld [vmem:[%s1758_s1 + $0x8] sm:$0xff] (!%p140_p9)   ;;  %v1439_v24 = vmov (!%p140_p9), 1   ;;  %vm474_vm4 = vcmask (!%p140_p9), 130048   ;;  %vm782_vm5 = vcmask (!%p140_p9), 326656  }
  0x11   : > { %v186_v15 = vld [vmem:[%s1759_s2 + $0x40] sm:$0xff] (!%p140_p9)  ;;  %v187_v16 = vld [vmem:[%s1759_s2 + $0x48] sm:$0xff] (!%p140_p9)  ;;  %v1339_v17 = vld [vmem:[%s1758_s1 + $0x10] sm:$0xff] (!%p140_p9)   ;;  %vm970_vm6 = vcmask (!%p140_p9), 261120   ;;  %s159_s4 = sand.u32 (!%p140_p9), 1, %s1423_s13   ;;  %s1150_s5 = sshll.u32 (!%p140_p9), %s1485_s16, 4 }
  0x12   : > { %v1340_v18 = vld [vmem:[%s1758_s1 + $0x18] sm:$0xff] (!%p140_p9)   ;;  %v1341_v19 = vld [vmem:[%s1758_s1 + $0x20] sm:$0xff] (!%p140_p9)   ;;  %v1342_v20 = vld [vmem:[%s1758_s1 + $0x28] sm:$0xff] (!%p140_p9)   ;;  %s160_s6 = scalar_lea.vmem (!%p140_p9), [#allocation2], %s159_s4  ;;  %s1715_s10 = scalar_lea.hbm (!%p140_p9), %s1760_s3, %s1150_s5 }
  0x13   : > { %1218 = vmatprep.mubr.msk.bf16.mxu1 (!%p140_p9), %vm409_vm3, %v1342_v20  ;;  %s1028_s7 = sshll.u32 (!%p140_p9), %s160_s6, 4  ;;  %s1016_s11 = scalar_lea.sflag (!%p140_p9), [#allocation3], %s159_s4  ;;  %s1717_s7 = int_to_ptr.vmem [resolvable:$true] %s1028_s7 }
  0x14   : > { %195 = vperm.xlu0 (!%p140_p9), %1324, %v1535_v6   ;;  %205 = vperm.xlu1 (!%p140_p9), %1325, %v1543_v8   ;;  %s1443_s17 = smov (!%p140_p9), [#allocation2]  }
  0x15   : > { %s162_s24 = scalar_select %p161_p10, %s1485_s16, 1 }
  0x16   : > { %s1369_s16 = scalar_lea.vmem %s1717_s7, 16  ;;  %s1373_s19 = sshll.u32 %s1443_s17, 4  ;;  %s1374_s19 = int_to_ptr.vmem [resolvable:$false] %s1373_s19 }
  0x17   : > { %s1087_s25 = sshll.u32 %s162_s24, 3  ;;  %p1370_p11 = scmp.ne.s32.totalorder %s1717_s7, %s1369_s16 }
  0x18   : > { %s164_s28 = scalar_lea.vmem %s1757_s0, %s1087_s25  ;;  %210 = vperm.xlu0 %1324, %v1549_v10   ;;  %215 = vperm.xlu1 %1325, %v1555_v11   ;;  %s1375_s20 = scalar_lea.vmem %s1374_s19, 32 }
  0x19   : > { %v166_v3 = vld [vmem:[%s164_s28] sm:$0xff]  ;;  %p1371_p12 = pnand %p1370_p11, %p1502_p5  ;;  %p1376_p0 = scmp.lt.s32.totalorder %s1717_s7, %s1374_s19 }
  0x1a   : > { %v167_v5 = vpack.c.bf16 %v166_v3, %v166_v3  ;;  %p1377_p1 = scmp.lt.s32.totalorder %s1375_s20, %s1369_s16 }
  0x1b   : > { %p1372_p13 = pneg %p1371_p12 }
  0x1c   : > { %v281_v9 = vsel %vm279_vm1, %v167_v5, 0  ;;  %220 = vperm.xlu0 %1324, %v1562_v12   ;;  %225 = vperm.xlu1 %1325, %v1571_v13   ;;  %p1378_p2 = por %p1377_p1, %p1376_p0 }
  0x1d   : > { %1189 = vmatpush3.bf16.msra.mxu0 %v281_v9 }
  0x1e   : > { %p1379_p3 = pnand %p1378_p2, %p1372_p13 }
  0x20   : > { %1191 = vmatmul.mubr.msk.bf16.vlgmr.msra.gmra.mrb[0].mxu0 %vm263_vm2, %v1337_v7  ;;  %230 = vperm.xlu0 %1324, %v186_v15  }
  0x21   : > { %1194 = vmatprep.mubr.msk.bf16.mxu0 %vm1434_vm0, %v1433_v0  ;;  %235 = vperm.xlu1 %1325, %v187_v16  }
  0x24   : > { %1326 = vset.pattern.permute.xlu0 %v1437_v22 }
  0x25   : > { %1327 = vset.pattern.permute.xlu1 %v1436_v21  ;;  %471 = vperm.xlu0 %1326, %v1523_v2  }
  0x26   : > { %526 = vperm.xlu1 %1327, %v1523_v2  }
  0x28   : > { %1195 = vmatmul.mubr.msk.bf16.gmra.mrb[4].mxu0 %vm263_vm2, %v1338_v14 }
  0x29   : > { %1198 = vmatprep.mubr.msk.bf16.mxu0 %vm1434_vm0, %v1433_v0  ;;  %1328 = vset.pattern.permute.xlu0 %v1438_v23 }
  0x2a   : > { %531 = vperm.xlu1 %1327, %v1535_v6   ;;  %595 = vperm.xlu0 %1328, %v1523_v2  }
  0x2e   : > { %1329 = vset.pattern.permute.xlu1 %v1438_v23  ;;  %607 = vperm.xlu0 %1328, %v1543_v8  }
  0x2f   : > { %599 = vperm.xlu1 %1329, %v1535_v6  }
  0x30   : > { %1199 = vmatmul.mubr.msk.bf16.gmra.mrb[8].mxu0 %vm263_vm2, %v1339_v17 }
  0x31   : > { %1202 = vmatprep.mubr.msk.bf16.mxu0 %vm1434_vm0, %v1433_v0 }
  0x32   : > { %1331 = vset.pattern.permute.xlu0 %v1439_v24 }
  0x33   : > { %603 = vperm.xlu1 %1329, %v1529_v4   ;;  %386 = vperm.xlu0 %1331, %v1535_v6  }
  0x37   : > { %1330 = vset.pattern.permute.xlu1 %v1439_v24 }
  0x38   : > { %1203 = vmatmul.mubr.msk.bf16.gmra.mrb[12].mxu0 %vm263_vm2, %v1340_v18  ;;  %381 = vperm.xlu1 %1330, %v1523_v2   ;;  %v1343_v18 = vld [vmem:[%s1758_s1 + $0x30] sm:$0xff]  }
  0x39   : > { %1206 = vmatprep.mubr.msk.bf16.mxu0 %vm1434_vm0, %v1433_v0 }
  0x3c   : > { %391 = vperm.xlu1 %1330, %v1529_v4  }
  0x40   : > { %1207 = vmatmul.mubr.msk.bf16.gmra.mrb[16].mxu0 %vm263_vm2, %v1341_v19  ;;  %396 = vperm.xlu1 %1330, %v1543_v8  }
  0x8f   : > { %v191_v25 = vpop.permute.xlu0 %190  ;;  %v201_v33 = vpop.permute.xlu1 %200 }
  0x93   : > { %v196_v29 = vpop.permute.xlu0 %195  ;;  %v206_v40 = vpop.permute.xlu1 %205 }
  0x97   : > { %v211_v47 = vpop.permute.xlu0 %210  ;;  %v216_v51 = vpop.permute.xlu1 %215 }
  0x9b   : > { %v221_v58 = vpop.permute.xlu0 %220  ;;  %v226_v62 = vpop.permute.xlu1 %225 }
  0x9f   : > { %v231_v14 = vpop.permute.xlu0 %230 }
  0xa0   : > { %v236_v19 = vpop.permute.xlu1 %235 }
  0xf3   : > { %v317_v26 = vpop.f32.mrb[0].mxu0 }
  0xf4   : > { %v318_v27 = vadd.f32 %v317_v26, %v191_v25  ;;  %v1192_v28 = vpop.f32.mrb[1].mxu0  ;;  %v1106_v26 = vld [vmem:[%s1758_s1 + $0x50] sm:$0xf] }
  0xf5   : > { %v320_v30 = vpop.f32.mrb[2].mxu0 }
  0xf6   : > { %v321_v31 = vadd.f32 %v320_v30, %v196_v29  ;;  %v1193_v32 = vpop.f32.mrb[3].mxu0  ;;  %v356_v34 = vmax.f32 %v318_v27, 0.0 }
  0xf8   : > { %v357_v35 = vmax.f32 %v321_v31, 0.0  ;;  %v472_v31 = vpop.permute.xlu0 %471 }
  0xfa   : > { %v366_v36 = vpack.c.bf16 %v357_v35, %v356_v34 }
  0xfb   : > { %v325_v37 = vpop.f32.mrb[4].mxu0 }
  0xfc   : > { %v326_v38 = vadd.f32 %v325_v37, %v201_v33  ;;  %v1196_v39 = vpop.f32.mrb[5].mxu0  ;;  %1210 = vmatprep.subr.bf16.mxu1 %v366_v36 }
  0xfd   : > { %v328_v41 = vpop.f32.mrb[6].mxu0  ;;  %1211 = vmatpush3.bf16.msra.mxu1 %v366_v36  ;;  %v1344_v39 = vld [vmem:[%s1758_s1 + $0x78] sm:$0xff]  }
  0xfe   : > { %v329_v42 = vadd.f32 %v328_v41, %v206_v40  ;;  %v1197_v43 = vpop.f32.mrb[7].mxu0  ;;  %v358_v44 = vmax.f32 %v326_v38, 0.0  ;;  %v1345_v40 = vld [vmem:[%s1758_s1 + $0xa0] sm:$0xff]   ;;  %v527_v41 = vpop.permute.xlu1 %526 }
 0x100   : > { %v359_v45 = vmax.f32 %v329_v42, 0.0 }
 0x102   : > { %v367_v46 = vpack.c.bf16 %v359_v45, %v358_v44  ;;  %v532_v45 = vpop.permute.xlu1 %531 }
 0x103   : > { %v333_v48 = vpop.f32.mrb[8].mxu0 }
 0x104   : > { %v334_v49 = vadd.f32 %v333_v48, %v211_v47  ;;  %v1200_v50 = vpop.f32.mrb[9].mxu0  ;;  %1212 = vmatprep.subr.bf16.mxu1 %v367_v46 }
 0x105   : > { %v336_v52 = vpop.f32.mrb[10].mxu0  ;;  %1213 = vmatpush3.bf16.msra.mxu1 %v367_v46 }
 0x106   : > { %v337_v53 = vadd.f32 %v336_v52, %v216_v51  ;;  %v1201_v54 = vpop.f32.mrb[11].mxu0  ;;  %v360_v55 = vmax.f32 %v334_v49, 0.0  ;;  %v1346_v52 = vld [vmem:[%s1758_s1 + $0xa8] sm:$0xff]  }
 0x107   : > { %v1440_v54 = vmov 5  }
 0x108   : > { %v361_v56 = vmax.f32 %v337_v53, 0.0  ;;  %v1347_v53 = vld [vmem:[%s1758_s1 + $0xc8] sm:$0xff]   ;;  %1333 = vset.pattern.permute.xlu1 %v1440_v54  ;;  %1332 = vset.pattern.permute.xlu0 %v1440_v54 }
 0x109   : > { %1246 = vmatprep.mubr.msk.bf16.mxu0 %vm782_vm5, %v1347_v53  ;;  %729 = vperm.xlu1 %1333, %v1535_v6  }
 0x10a   : > { %v368_v57 = vpack.c.bf16 %v361_v56, %v360_v55  ;;  %724 = vperm.xlu0 %1332, %v1523_v2   ;;  %v600_v55 = vpop.permute.xlu1 %599  ;;  %v596_v56 = vpop.permute.xlu0 %595 }
 0x10b   : > { %v341_v59 = vpop.f32.mrb[12].mxu0 }
 0x10c   : > { %v342_v60 = vadd.f32 %v341_v59, %v221_v58  ;;  %v1204_v61 = vpop.f32.mrb[13].mxu0  ;;  %1214 = vmatprep.subr.bf16.mxu1 %v368_v57 }
 0x10d   : > { %v344_v63 = vpop.f32.mrb[14].mxu0  ;;  %1215 = vmatpush3.bf16.msra.mxu1 %v368_v57  ;;  %734 = vperm.xlu1 %1333, %v1529_v4  }
 0x10e   : > { %v345_v1 = vadd.f32 %v344_v63, %v226_v62  ;;  %v1205_v3 = vpop.f32.mrb[15].mxu0  ;;  %v362_v5 = vmax.f32 %v342_v60, 0.0  ;;  %739 = vperm.xlu0 %1332, %v1543_v8   ;;  %v604_v57 = vpop.permute.xlu1 %603 }
 0x10f   : > { %v608_v61 = vpop.permute.xlu0 %607 }
 0x110   : > { %v363_v7 = vmax.f32 %v345_v1, 0.0 }
 0x111   : > { %744 = vperm.xlu1 %1333, %v1549_v10  }
 0x112   : > { %v369_v9 = vpack.c.bf16 %v363_v7, %v362_v5  ;;  %749 = vperm.xlu0 %1332, %v1555_v11  }
 0x113   : > { %v349_v15 = vpop.f32.mrb[16].mxu0 }
 0x114   : > { %v350_v16 = vadd.f32 %v349_v15, %v231_v14  ;;  %v1208_v17 = vpop.f32.mrb[17].mxu0  ;;  %1216 = vmatprep.subr.bf16.mxu1 %v369_v9 }
 0x115   : > { %v352_v20 = vpop.f32.mrb[18].mxu0  ;;  %1217 = vmatpush3.bf16.msra.mxu1 %v369_v9  ;;  %754 = vperm.xlu1 %1333, %v1562_v12  }
 0x116   : > { %v353_v21 = vadd.f32 %v352_v20, %v236_v19  ;;  %v1209_v22 = vpop.f32.mrb[19].mxu0  ;;  %1222 = vmatprep.subr.bf16.mxu1 %v1433_v0  ;;  %v364_v23 = vmax.f32 %v350_v16, 0.0  ;;  %759 = vperm.xlu0 %1332, %v1571_v13   ;;  %v382_v13 = vpop.permute.xlu1 %381 }
 0x118   : > { %v365_v24 = vmax.f32 %v353_v21, 0.0  ;;  %1219 = vmatmul.mubr.msk.bf16.vlgmr.msra.gmra.mrb[0].mxu1 %vm409_vm3, %v1343_v18 }
 0x119   : > { %1224 = vmatprep.mubr.msk.bf16.mxu1 %vm1434_vm0, %v1433_v0 }
 0x11a   : > { %v465_v25 = vpack.c.bf16 %v365_v24, %v364_v23  ;;  %v392_v21 = vpop.permute.xlu1 %391  ;;  %v387_v24 = vpop.permute.xlu0 %386 }
 0x11c   : > { %1223 = vmatpush3.bf16.msra.mxu1 %v465_v25 }
 0x11d   : > { %1228 = vmatprep.subr.bf16.mxu1 %v1433_v0 }
 0x11e   : > { %v397_v22 = vpop.permute.xlu1 %396 }
 0x120   : > { %1225 = vmatmul.mubr.msk.bf16.vlgmr.msra.gmra.mrb[4].mxu1 %vm474_vm4, %v1106_v26 }
 0x121   : > { %1230 = vmatprep.mubr.msk.bf16.mxu1 %vm1434_vm0, %v1433_v0 }
 0x1eb   : > { %v1632_v27 = vpop.f32.mrb[0].mxu1 }
 0x1ec   : > { %v1634_v28 = vpop.f32.mrb[1].mxu1  ;;  %v459_v23 = vadd.f32 %v1632_v27, %v392_v21  ;;  %v1348_v27 = vld [vmem:[%s1758_s1 + $0xd0] sm:$0xff]  }
 0x1ed   : > { %v1636_v29 = vpop.f32.mrb[2].mxu1  ;;  %v451_v26 = vadd.f32 %v1634_v28, %v382_v13  ;;  %v1349_v28 = vld [vmem:[%s1758_s1 + $0xd8] sm:$0xff]  }
 0x1ee   : > { %v1638_v30 = vpop.f32.mrb[3].mxu1 }
 0x1f3   : > { %v512_v32 = vpop.f32.mrb[4].mxu1 }
 0x1f4   : > { %v513_v33 = vadd.f32 %v512_v32, %v472_v31  ;;  %v1226_v34 = vpop.f32.mrb[5].mxu1  ;;  %v462_v32 = vadd.f32 %v1636_v29, %v397_v22  ;;  %v1350_v29 = vld [vmem:[%s1758_s1 + $0xe0] sm:$0xff]  }
 0x1f5   : > { %v515_v35 = vpop.f32.mrb[6].mxu1 }
 0x1f6   : > { %v1640_v36 = vpack.c.bf16 %v513_v33, %v513_v33  ;;  %v1227_v37 = vpop.f32.mrb[7].mxu1  ;;  %v454_v35 = vadd.f32 %v1638_v30, %v387_v24  ;;  %v1351_v30 = vld [vmem:[%s1758_s1 + $0xf0] sm:$0xff]  }
 0x1f8   : > { %v1644_v38 = vsel %vm279_vm1, %v1640_v36, 0 }
 0x1f9   : > { %1229 = vmatpush3.bf16.msra.mxu1 %v1644_v38 }
 0x1fc   : > { %1231 = vmatmul.mubr.msk.bf16.vlgmr.msra.gmra.mrb[8].mxu1 %vm263_vm2, %v1344_v39 }
 0x1fd   : > { %1236 = vmatprep.mubr.msk.bf16.mxu1 %vm474_vm4, %v1345_v40 }
 0x2cf   : > { %v579_v42 = vpop.f32.mrb[8].mxu1 }
 0x2d0   : > { %v580_v43 = vadd.f32 %v579_v42, %v527_v41  ;;  %v1232_v44 = vpop.f32.mrb[9].mxu1 }
 0x2d1   : > { %v582_v46 = vpop.f32.mrb[10].mxu1  ;;  %v725_v44 = vpop.permute.xlu0 %724 }
 0x2d2   : > { %v583_v47 = vadd.f32 %v582_v46, %v532_v45  ;;  %v1233_v48 = vpop.f32.mrb[11].mxu1  ;;  %v586_v49 = vmax.f32 %v580_v43, 0.0 }
 0x2d4   : > { %v587_v50 = vmax.f32 %v583_v47, 0.0 }
 0x2d5   : > { %v740_v46 = vpop.permute.xlu0 %739 }
 0x2d6   : > { %v588_v51 = vpack.c.bf16 %v587_v50, %v586_v49 }
 0x2d8   : > { %1234 = vmatprep.subr.bf16.mxu1 %v588_v51 }
 0x2d9   : > { %1235 = vmatpush3.bf16.msra.mxu1 %v588_v51 }
 0x2dc   : > { %1237 = vmatmul.mubr.msk.bf16.vlgmr.msra.gmra.mrb[12].mxu1 %vm474_vm4, %v1346_v52 }
 0x2dd   : > { %1262 = vmatprep.mubr.msk.bf16.mxu1 %vm409_vm3, %v1351_v30 }
 0x3af   : > { %v1238_v58 = vpop.f32.mrb[12].mxu1 }
 0x3b0   : > { %v669_v59 = vadd.f32 %v1238_v58, %v604_v57  ;;  %v660_v60 = vpop.f32.mrb[13].mxu1 }
 0x3b1   : > { %v661_v62 = vadd.f32 %v660_v60, %v596_v56  ;;  %v1239_v63 = vpop.f32.mrb[14].mxu1  ;;  %v750_v56 = vpop.permute.xlu0 %749 }
 0x3b2   : > { %v1122_v1 = vmul.f32 -1.442695, %v669_v59  ;;  %v672_v3 = vadd.f32 %v1239_v63, %v608_v61  ;;  %v663_v5 = vpop.f32.mrb[15].mxu1 }
 0x3b3   : > { %v1120_v7 = vmul.f32 -1.442695, %v661_v62  ;;  %v664_v10 = vadd.f32 %v663_v5, %v600_v55 }
 0x3b4   : > { %1353 = vpow2.f32 %v1122_v1  ;;  %v1123_v11 = vmul.f32 -1.442695, %v672_v3 }
 0x3b5   : > { %1355 = vpow2.f32 %v1120_v7  ;;  %v1121_v12 = vmul.f32 -1.442695, %v664_v10  ;;  %v760_v5 = vpop.permute.xlu0 %759 }
 0x3b6   : > { %1357 = vpow2.f32 %v1123_v11 }
 0x3b7   : > { %1359 = vpow2.f32 %v1121_v12 }
 0x3be   : > { %v1354_v9 = vpop.eup %1353 }
 0x3bf   : > { %v1356_v14 = vpop.eup %1355  ;;  %v689_v15 = vadd.f32 1.0, %v1354_v9 }
 0x3c0   : > { %v1358_v16 = vpop.eup %1357  ;;  %v687_v17 = vadd.f32 1.0, %v1356_v14 }
 0x3c1   : > { %v1360_v18 = vpop.eup %1359  ;;  %1361 = vrcp.f32 %v689_v15  ;;  %v690_v19 = vadd.f32 1.0, %v1358_v16 }
 0x3c2   : > { %1363 = vrcp.f32 %v687_v17  ;;  %v688_v20 = vadd.f32 1.0, %v1360_v18  ;;  %v1352_v17 = vld [vmem:[%s1758_s1 + $0xf8] sm:$0xff]   ;;  %v1442_v18 = vmov 7  }
 0x3c3   : > { %1365 = vrcp.f32 %v690_v19 }
 0x3c4   : > { %1367 = vrcp.f32 %v688_v20 }
 0x3cb   : > { %v1362_v25 = vpop.eup %1361 }
 0x3cc   : > { %v1364_v31 = vpop.eup %1363  ;;  %v701_v33 = vmul.f32 %v1362_v25, %v459_v23 }
 0x3cd   : > { %v1366_v34 = vpop.eup %1365  ;;  %v699_v37 = vmul.f32 %v1364_v31, %v451_v26 }
 0x3ce   : > { %v1368_v39 = vpop.eup %1367  ;;  %v702_v40 = vmul.f32 %v1366_v34, %v462_v32 }
 0x3cf   : > { %v700_v41 = vmul.f32 %v1368_v39, %v454_v35 }
 0x3d0   : > { %v704_v42 = vpack.c.bf16 %v702_v40, %v701_v33 }
 0x3d1   : > { %v703_v43 = vpack.c.bf16 %v700_v41, %v699_v37 }
 0x3d3   : > { %1240 = vmatprep.subr.bf16.mxu0 %v703_v43 }
 0x3d4   : > { %1241 = vmatpush3.bf16.msra.mxu0 %v703_v43 }
 0x3d5   : > { %1242 = vmatprep.subr.bf16.mxu0 %v704_v42 }
 0x3d8   : > { %1243 = vmatpush3.bf16.msra.mxu0 %v704_v42  ;;  %v1148_v42 = vld [vmem:[%s1758_s1 + $0x118] sm:$0xf] }
 0x3d9   : > { %1274 = vmatprep.subr.msk.bf16.mxu0 %vm279_vm1, %v1640_v36  ;;  %v1441_v36 = vmov 6  }
 0x3da   : > { %1334 = vset.pattern.permute.xlu1 %v1441_v36  ;;  %1335 = vset.pattern.permute.xlu0 %v1441_v36 }
 0x3db   : > { %878 = vperm.xlu1 %1334, %v1523_v2   ;;  %882 = vperm.xlu0 %1335, %v1535_v6  }
 0x3dc   : > { %1245 = vmatpush3.bf16.msra.mxu0 %v1644_v38  ;;  %v730_v38 = vpop.permute.xlu1 %729 }
 0x3dd   : > { %1266 = vmatprep.subr.bf16.mxu0 %v1433_v0 }
 0x3df   : > { %1247 = vmatmul.mubr.msk.bf16.vlgmr.msra.gmra.mrb[20].mxu0 %vm782_vm5, %v1348_v27  ;;  %886 = vperm.xlu1 %1334, %v1529_v4  }
 0x3e0   : > { %1250 = vmatprep.mubr.msk.bf16.mxu0 %vm782_vm5, %v1349_v28  ;;  %v735_v45 = vpop.permute.xlu1 %734  ;;  %1336 = vset.pattern.permute.xlu0 %v1442_v18 }
 0x3e1   : > { %967 = vperm.xlu0 %1336, %v1523_v2  }
 0x3e3   : > { %890 = vperm.xlu1 %1334, %v1543_v8  }
 0x3e4   : > { %v745_v52 = vpop.permute.xlu1 %744 }
 0x3e7   : > { %1251 = vmatmul.mubr.msk.bf16.gmra.mrb[24].mxu0 %vm782_vm5, %v1350_v29 }
 0x3e8   : > { %1270 = vmatprep.mubr.msk.bf16.mxu0 %vm1434_vm0, %v1433_v0  ;;  %v755_v61 = vpop.permute.xlu1 %754 }
 0x45a   : > { %v879_v19 = vpop.permute.xlu1 %878  ;;  %v883_v24 = vpop.permute.xlu0 %882 }
 0x45e   : > { %v887_v20 = vpop.permute.xlu1 %886 }
 0x460   : > { %v968_v43 = vpop.permute.xlu0 %967 }
 0x462   : > { %v891_v31 = vpop.permute.xlu1 %890 }
 0x4b2   : > { %v1248_v47 = vpop.f32.mrb[20].mxu0 }
 0x4b3   : > { %v829_v48 = vpop.f32.mrb[21].mxu0  ;;  %v838_v49 = vadd.f32 %v1248_v47, %v735_v45 }
 0x4b4   : > { %v1249_v50 = vpop.f32.mrb[22].mxu0  ;;  %v830_v51 = vadd.f32 %v829_v48, %v725_v44 }
 0x4b5   : > { %v832_v53 = vpop.f32.mrb[23].mxu0  ;;  %v841_v54 = vadd.f32 %v1249_v50, %v740_v46  ;;  %v862_v57 = vmax.f32 %v838_v49, 0.0 }
 0x4b6   : > { %v833_v55 = vadd.f32 %v832_v53, %v730_v38  ;;  %v860_v58 = vmax.f32 %v830_v51, 0.0 }
 0x4b7   : > { %v863_v6 = vmax.f32 %v841_v54, 0.0 }
 0x4b8   : > { %v861_v4 = vmax.f32 %v833_v55, 0.0 }
 0x4b9   : > { %v869_v59 = vpack.c.bf16 %v863_v6, %v862_v57 }
 0x4ba   : > { %v868_v8 = vpack.c.bf16 %v861_v4, %v860_v58  ;;  %v1252_v60 = vpop.f32.mrb[24].mxu0 }
 0x4bb   : > { %v845_v62 = vpop.f32.mrb[25].mxu0  ;;  %v854_v63 = vadd.f32 %v1252_v60, %v755_v61 }
 0x4bc   : > { %v1253_v1 = vpop.f32.mrb[26].mxu0  ;;  %1254 = vmatprep.subr.bf16.mxu1 %v868_v8  ;;  %v846_v3 = vadd.f32 %v845_v62, %v745_v52 }
 0x4bd   : > { %v848_v7 = vpop.f32.mrb[27].mxu0  ;;  %1255 = vmatpush3.bf16.msra.mxu1 %v868_v8  ;;  %v857_v10 = vadd.f32 %v1253_v1, %v760_v5  ;;  %v866_v12 = vmax.f32 %v854_v63, 0.0 }
 0x4be   : > { %v849_v11 = vadd.f32 %v848_v7, %v750_v56  ;;  %1256 = vmatprep.subr.bf16.mxu1 %v869_v59  ;;  %v864_v9 = vmax.f32 %v846_v3, 0.0 }
 0x4bf   : > { %v867_v13 = vmax.f32 %v857_v10, 0.0 }
 0x4c0   : > { %v865_v14 = vmax.f32 %v849_v11, 0.0 }
 0x4c1   : > { %v871_v15 = vpack.c.bf16 %v867_v13, %v866_v12  ;;  %1257 = vmatpush3.bf16.msra.mxu1 %v869_v59 }
 0x4c2   : > { %v870_v16 = vpack.c.bf16 %v865_v14, %v864_v9 }
 0x4c4   : > { %1258 = vmatprep.subr.bf16.mxu1 %v870_v16 }
 0x4c5   : > { %1259 = vmatpush3.bf16.msra.mxu1 %v870_v16 }
 0x4c6   : > { %1260 = vmatprep.subr.bf16.mxu1 %v871_v15 }
 0x4c9   : > { %1261 = vmatpush3.bf16.msra.mxu1 %v871_v15 }
 0x4cc   : > { %1263 = vmatmul.mubr.msk.bf16.vlgmr.msra.gmra.mrb[16].mxu1 %vm409_vm3, %v1352_v17 }
 0x59f   : > { %v1264_v21 = vpop.f32.mrb[16].mxu1 }
 0x5a0   : > { %v943_v22 = vpop.f32.mrb[17].mxu1  ;;  %v952_v23 = vadd.f32 %v1264_v21, %v887_v20 }
 0x5a1   : > { %v944_v25 = vadd.f32 %v943_v22, %v879_v19  ;;  %v1265_v26 = vpop.f32.mrb[18].mxu1 }
 0x5a2   : > { %v946_v32 = vpop.f32.mrb[19].mxu1  ;;  %v955_v33 = vadd.f32 %v1265_v26, %v891_v31  ;;  %v960_v35 = vmax.f32 %v952_v23, 0.0 }
 0x5a3   : > { %v947_v34 = vadd.f32 %v946_v32, %v883_v24  ;;  %v958_v39 = vmax.f32 %v944_v25, 0.0 }
 0x5a4   : > { %v961_v37 = vmax.f32 %v955_v33, 0.0 }
 0x5a5   : > { %v959_v40 = vmax.f32 %v947_v34, 0.0 }
 0x5a6   : > { %v963_v41 = vpack.c.bf16 %v961_v37, %v960_v35 }
 0x5a7   : > { %v962_v2 = vpack.c.bf16 %v959_v40, %v958_v39 }
 0x5a9   : > { %1267 = vmatpush3.bf16.msra.mxu0 %v962_v2 }
 0x5aa   : > { %1268 = vmatprep.subr.bf16.mxu0 %v1433_v0 }
 0x5ad   : > { %1269 = vmatpush3.bf16.msra.mxu0 %v963_v41 }
 0x5b0   : > { %1271 = vmatmul.mubr.msk.bf16.vlgmr.msra.gmra.mrb[28].mxu0 %vm970_vm6, %v1148_v42 }
 0x683   : > { %v1008_v27 = vpop.f32.mrb[28].mxu0 }
 0x684   : > { %v1272_v28 = vpop.f32.mrb[29].mxu0  ;;  %v1009_v29 = vadd.f32 %v1008_v27, %v968_v43 }
 0x685   : > { %v1011_v0 = vpop.f32.mrb[30].mxu0 }
 0x686   : > { %1014 = vst [vmem:[%s160_s6] sm:$0x1] %v1009_v29  ;;  %v1273_v30 = vpop.f32.mrb[31].mxu0 }
 0x687   : > { %1382 = shalt.err (!%p1379_p3)
}
 0x688   : > { %s1383_s24 = scalar_lea.hbm %s1715_s10, 16  ;;  %s1387_s27 = scalar_lea.hbm %s1760_s3, 32 }
 0x689   : > { %p1384_p4 = scmp.ne.s32.totalorder %s1715_s10, %s1383_s24  ;;  %p1388_p9 = scmp.lt.u32.totalorder %s1715_s10, %s1760_s3 }
 0x68a   : > { %p1389_p10 = scmp.lt.u32.totalorder %s1387_s27, %s1383_s24  ;;  %p1391_p12 = scmp.lt.u32.totalorder %s1383_s24, %s1715_s10 }
 0x68b   : > { %p1385_p7 = pnand %p1384_p4, %p1502_p5 }
 0x68c   : > { %p1390_p11 = por %p1389_p10, %p1388_p9 }
 0x68d   : > { %p1386_p8 = pneg %p1385_p7 }
 0x68e   : > { %p1392_p13 = por %p1391_p12, %p1390_p11 }
 0x690   : > { %p1393_p0 = pnand %p1392_p13, %p1386_p8 }
 0x692   : > { %1396 = shalt.err (!%p1393_p0)
}
 0x693   : > { %1275 = dma.vmem_to_hbm [thread:$0]  (%p1502_p5), %s1717_s7, 16, %s1715_s10, %s1016_s11  }
 0x694 PF: > { %p1281_p1 = scmp.ge.s32.totalorder %s1431_s15, 2  ;;  %s1040_s30 = sand.u32 1, %s1419_s12  }
 0x695   : > { %s1041_s4 = scalar_lea.sflag [#allocation3], %s1040_s30 }
 0x696   : > { %p1278_p2 = pnand %p1281_p1, %p1506_p6 }
 0x698   : > { %1414 = dma.done.wait (!%p1278_p2), %s1041_s4, 16  }
 0x699   : > { %1416 = vsyncadd (!%p1278_p2), %s1041_s4, 4294967280  ;;  %p13_p3 = scmp.ge.s32.totalorder %s1489_s18, 4   ;;  %s1763_s12 = smov %s1423_s13 }
 0x69a   : > { %s1764_s13 = smov %s1427_s14  ;;  %s1765_s14 = smov %s1500_s21 }
 0x69b   : > { %s1766_s15 = smov %s1489_s18  ;;  %15 = sbr.rel (!%p13_p3) target bundleno = 3 (0x3), region = 74 }
 0x6a2   :  { %1045 = vsyncpa [#allocation3], 1 }
 0x6a3   :  { %1047 = vsyncpa [#allocation3 + $0x1], 1 }

</bundles_post_ra>
